<compile_context>
chip_gen: v6e
topology: v6e:2x2x1
jax: 0.10.0
libtpu: 0.0.40
codegen_flags: <defaults>
</compile_context>

<pallas_src>
import functools

import jax
import jax.numpy as jnp
from jax.experimental import pallas as pl
from jax.experimental.pallas import tpu as pltpu


def _patch_embed_kernel(x_ref, w_ref, b_ref, o_ref):
    # x_ref: (1, TP, K)  w_ref: (K, Ep)  b_ref: (1, Ep)  o_ref: (1, TP, Ep)
    acc = jnp.dot(x_ref[0], w_ref[...], preferred_element_type=jnp.float32)
    acc = acc + b_ref[...]              # bias broadcast over the patch rows
    o_ref[0] = acc.astype(o_ref.dtype)


def _pick_patch_tile(n_patches, cap=512):
    """Largest tile <= cap that is a multiple of 8 and divides n_patches.

    Falls back to the full axis (always a legal block shape).  cap=512 keeps
    (x tile + out tile) double-buffered + weight well inside the default
    scoped VMEM even on v5e for ViT-B sized K/E; it could be raised on v6e.
    """
    if n_patches <= cap:
        return n_patches
    start = cap - (cap % 8)
    for tp in range(start, 7, -8):
        if n_patches % tp == 0:
            return tp
    return n_patches


@functools.partial(jax.jit, static_argnums=(3, 4, 5))
def _patch_embed_impl(x_nchw, weight, bias, patch_size, single_buffer_weights,
                      compute_dtype):
    B, C, H, W = x_nchw.shape
    P = patch_size
    assert H % P == 0 and W % P == 0
    E = weight.shape[0]
    gh, gw = H // P, W // P
    n_patches = gh * gw
    K = C * P * P

    # Patch extraction: (B,C,H,W) -> (B, n_patches, C*P*P), (c, ph, pw) order.
    # With allow_input_fusion below, XLA fuses this transpose into the kernel's
    # input DMA rather than materializing `patches` in HBM first.
    patches = (
        x_nchw.reshape(B, C, gh, P, gw, P)
        .transpose(0, 2, 4, 1, 3, 5)
        .reshape(B, n_patches, K)
    )

    # Conv weight (E, C, P, P) flattened in (c, ph, pw) order -> (K, E).
    w_mat = weight.reshape(E, K).T
    b_mat = bias.reshape(1, E).astype(jnp.float32)

    if compute_dtype is not None:       # optional bf16 MXU path (v6e / v7x)
        patches = patches.astype(compute_dtype)
        w_mat = w_mat.astype(compute_dtype)

    # Pad the embed dim to a multiple of 128 so stores are lane-dense.
    E_pad = ((E + 127) // 128) * 128
    if E_pad != E:
        w_mat = jnp.pad(w_mat, ((0, 0), (0, E_pad - E)))
        b_mat = jnp.pad(b_mat, ((0, 0), (0, E_pad - E)))

    TP = _pick_patch_tile(n_patches)
    n_tiles = n_patches // TP

    # Weight/bias block index never changes across the grid -> single-buffer
    # them to reclaim VMEM for larger activation tiles.
    wb_kwargs = {"pipeline_mode": pl.Buffered(1)} if single_buffer_weights else {}
    w_spec = pl.BlockSpec((K, E_pad), lambda b, p: (0, 0), **wb_kwargs)
    b_spec = pl.BlockSpec((1, E_pad), lambda b, p: (0, 0), **wb_kwargs)

    out_dtype = x_nchw.dtype
    cost = pl.CostEstimate(
        flops=int(2 * B * n_patches * K * E_pad),
        transcendentals=0,
        bytes_accessed=int(
            patches.size * patches.dtype.itemsize
            + w_mat.size * w_mat.dtype.itemsize
            + B * n_patches * E_pad * jnp.dtype(out_dtype).itemsize
        ),
    )

    out = pl.pallas_call(
        _patch_embed_kernel,
        out_shape=jax.ShapeDtypeStruct((B, n_patches, E_pad), out_dtype),
        grid_spec=pltpu.PrefetchScalarGridSpec(
            num_scalar_prefetch=0,
            grid=(B, n_tiles),
            in_specs=[
                pl.BlockSpec((1, TP, K), lambda b, p: (b, p, 0)),
                w_spec,
                b_spec,
            ],
            out_specs=pl.BlockSpec((1, TP, E_pad), lambda b, p: (b, p, 0)),
        ),
        compiler_params=pltpu.CompilerParams(
            dimension_semantics=("parallel", "parallel"),
            allow_input_fusion=[True, False, False],
        ),
        cost_estimate=cost,
    )(patches, w_mat, b_mat)

    if E_pad != E:
        out = out[:, :, :E]
    return out


def patch_embed(x_nchw, weight, bias, patch_size, compute_dtype=None):
    """x_nchw: (B, C, H, W), weight: (E, C, P, P), bias: (E,) -> (B, n_patches, E)."""
    try:
        return jax.block_until_ready(
            _patch_embed_impl(x_nchw, weight, bias, patch_size, True, compute_dtype)
        )
    except Exception:
        # Fallback for jax builds where BlockSpec(pipeline_mode=...) is not
        # accepted by the top-level TPU grid pipeline: double-buffer weights.
        return jax.block_until_ready(
            _patch_embed_impl(x_nchw, weight, bias, patch_size, False, compute_dtype)
        )


if __name__ == "__main__":
    # Small, consistent shapes: img_size=16, patch_size=4, in_channels=4, embed_dim=32
    B, C, IMG, P, E = 2, 4, 16, 4, 32
    n_patches = (IMG // P) ** 2

    key = jax.random.PRNGKey(0)
    kx, kw, kb = jax.random.split(key, 3)
    x = jax.random.normal(kx, (B, C, IMG, IMG), dtype=jnp.float32)
    # deterministic parameter init (Conv2d-like fan_in scaling)
    fan_in = C * P * P
    weight = jax.random.normal(kw, (E, C, P, P), dtype=jnp.float32) / jnp.sqrt(fan_in)
    bias = jax.random.normal(kb, (E,), dtype=jnp.float32) * 0.01

    out = patch_embed(x, weight, bias, P)   # default f32 compute, same numerics as PyTorch
    out = jax.block_until_ready(out)
    assert out.shape == (B, n_patches, E), out.shape

    # pure-JAX reference (same as strided conv + flatten + transpose)
    ref_patches = (
        x.reshape(B, C, IMG // P, P, IMG // P, P)
        .transpose(0, 2, 4, 1, 3, 5)
        .reshape(B, n_patches, C * P * P)
    )
    ref = jnp.einsum("bpk,ke->bpe", ref_patches, weight.reshape(E, -1).T) + bias
    assert jnp.allclose(out, ref, atol=1e-4, rtol=1e-4), float(jnp.max(jnp.abs(out - ref)))

    print("KERNEL_OK")
</pallas_src>

<mosaic_0001>
module attributes {stable_mosaic.version = 11 : i64} {
  func.func @_patch_embed_kernel(%arg0: i32, %arg1: i32, %arg2: memref<1x16x64xf32, #tpu.memory_space<vmem>>, %arg3: memref<64x128xf32, #tpu.memory_space<vmem>>, %arg4: memref<1x128xf32, #tpu.memory_space<vmem>>, %arg5: memref<1x16x128xf32, #tpu.memory_space<vmem>>) attributes {dimension_semantics = [#tpu.dimension_semantics<parallel>, #tpu.dimension_semantics<parallel>], iteration_bounds = array<i64: 2, 1>, scalar_prefetch = 0 : i64, scratch_operands = 0 : i64, tpu.core_type = #tpu.core_type<tc>, window_params = [{transform_indices = @transform_0, window_bounds = array<i64: 1, 16, 64>}, {pipeline_mode = #tpu.pipeline_mode<synchronous>, transform_indices = @transform_1, window_bounds = array<i64: 64, 128>}, {pipeline_mode = #tpu.pipeline_mode<synchronous>, transform_indices = @transform_2, window_bounds = array<i64: 1, 128>}, {transform_indices = @transform_3, window_bounds = array<i64: 1, 16, 128>}]} {
    %c0 = arith.constant 0 : index
    %c0_0 = arith.constant 0 : index
    %c0_1 = arith.constant 0 : index
    %0 = vector.load %arg2[%c0, %c0_0, %c0_1] : memref<1x16x64xf32, #tpu.memory_space<vmem>>, vector<1x16x64xf32>
    %1 = vector.shape_cast %0 : vector<1x16x64xf32> to vector<16x64xf32>
    %c0_2 = arith.constant 0 : index
    %c0_3 = arith.constant 0 : index
    %2 = vector.load %arg3[%c0_2, %c0_3] : memref<64x128xf32, #tpu.memory_space<vmem>>, vector<64x128xf32>
    %cst = arith.constant dense<0.000000e+00> : vector<16x128xf32>
    %3 = tpu.matmul %1, %2, %cst {dimension_numbers = #tpu.dot_dimension_numbers<[1], [0], [0], [1], [0, 0, 1, 1], [], []>} : vector<16x64xf32>, vector<64x128xf32>, vector<16x128xf32> -> vector<16x128xf32>
    %c0_4 = arith.constant 0 : index
    %c0_5 = arith.constant 0 : index
    %4 = vector.load %arg4[%c0_4, %c0_5] : memref<1x128xf32, #tpu.memory_space<vmem>>, vector<1x128xf32>
    %5 = vector.broadcast %4 : vector<1x128xf32> to vector<16x128xf32>
    %6 = arith.addf %3, %5 : vector<16x128xf32>
    %c0_6 = arith.constant 0 : index
    %c0_7 = arith.constant 0 : index
    %c0_8 = arith.constant 0 : index
    %7 = vector.load %arg5[%c0_6, %c0_7, %c0_8] : memref<1x16x128xf32, #tpu.memory_space<vmem>>, vector<1x16x128xf32>
    %8 = vector.shape_cast %7 : vector<1x16x128xf32> to vector<16x128xf32>
    %9 = vector.shape_cast %6 : vector<16x128xf32> to vector<1x16x128xf32>
    tpu.vector_store %arg5[%c0_6, %c0_7, %c0_8], %9 {strides = array<i32>} : memref<1x16x128xf32, #tpu.memory_space<vmem>>, vector<1x16x128xf32>,
    return
  }
  func.func @transform_0(%arg0: i32, %arg1: i32) -> (i32, i32, i32) {
    %c0_i32 = arith.constant 0 : i32
    %c0_i32_0 = arith.constant 0 : i32
    return %arg0, %arg1, %c0_i32 : i32, i32, i32
  }
  func.func @transform_1(%arg0: i32, %arg1: i32) -> (i32, i32) {
    %c0_i32 = arith.constant 0 : i32
    %c0_i32_0 = arith.constant 0 : i32
    %c0_i32_1 = arith.constant 0 : i32
    return %c0_i32, %c0_i32_0 : i32, i32
  }
  func.func @transform_2(%arg0: i32, %arg1: i32) -> (i32, i32) {
    %c0_i32 = arith.constant 0 : i32
    %c0_i32_0 = arith.constant 0 : i32
    %c0_i32_1 = arith.constant 0 : i32
    return %c0_i32, %c0_i32_0 : i32, i32
  }
  func.func @transform_3(%arg0: i32, %arg1: i32) -> (i32, i32, i32) {
    %c0_i32 = arith.constant 0 : i32
    %c0_i32_0 = arith.constant 0 : i32
    return %arg0, %arg1, %c0_i32 : i32, i32, i32
  }
}

module attributes {stable_mosaic.version = 11 : i64} {
  func.func @_patch_embed_kernel(%arg0: i32, %arg1: i32, %arg2: memref<1x16x64xf32, #tpu.memory_space<vmem>>, %arg3: memref<64x128xf32, #tpu.memory_space<vmem>>, %arg4: memref<1x128xf32, #tpu.memory_space<vmem>>, %arg5: memref<1x16x128xf32, #tpu.memory_space<vmem>>) attributes {dimension_semantics = [#tpu.dimension_semantics<parallel>, #tpu.dimension_semantics<parallel>], iteration_bounds = array<i64: 2, 1>, scalar_prefetch = 0 : i64, scratch_operands = 0 : i64, tpu.core_type = #tpu.core_type<tc>, window_params = [{transform_indices = @transform_0, window_bounds = array<i64: 1, 16, 64>}, {pipeline_mode = #tpu.pipeline_mode<synchronous>, transform_indices = @transform_1, window_bounds = array<i64: 64, 128>}, {pipeline_mode = #tpu.pipeline_mode<synchronous>, transform_indices = @transform_2, window_bounds = array<i64: 1, 128>}, {transform_indices = @transform_3, window_bounds = array<i64: 1, 16, 128>}]} {
    %c0 = arith.constant 0 : index
    %c0_0 = arith.constant 0 : index
    %c0_1 = arith.constant 0 : index
    %0 = vector.load %arg2[%c0, %c0_0, %c0_1] : memref<1x16x64xf32, #tpu.memory_space<vmem>>, vector<1x16x64xf32>
    %1 = vector.shape_cast %0 : vector<1x16x64xf32> to vector<16x64xf32>
    %c0_2 = arith.constant 0 : index
    %c0_3 = arith.constant 0 : index
    %2 = vector.load %arg3[%c0_2, %c0_3] : memref<64x128xf32, #tpu.memory_space<vmem>>, vector<64x128xf32>
    %cst = arith.constant dense<0.000000e+00> : vector<16x128xf32>
    %3 = tpu.matmul %1, %2, %cst {dimension_numbers = #tpu.dot_dimension_numbers<[1], [0], [0], [1], [0, 0, 1, 1], [], []>} : vector<16x64xf32>, vector<64x128xf32>, vector<16x128xf32> -> vector<16x128xf32>
    %c0_4 = arith.constant 0 : index
    %c0_5 = arith.constant 0 : index
    %4 = vector.load %arg4[%c0_4, %c0_5] : memref<1x128xf32, #tpu.memory_space<vmem>>, vector<1x128xf32>
    %5 = vector.broadcast %4 : vector<1x128xf32> to vector<16x128xf32>
    %6 = arith.addf %3, %5 : vector<16x128xf32>
    %c0_6 = arith.constant 0 : index
    %c0_7 = arith.constant 0 : index
    %c0_8 = arith.constant 0 : index
    %7 = vector.load %arg5[%c0_6, %c0_7, %c0_8] : memref<1x16x128xf32, #tpu.memory_space<vmem>>, vector<1x16x128xf32>
    %8 = vector.shape_cast %7 : vector<1x16x128xf32> to vector<16x128xf32>
    %9 = vector.shape_cast %6 : vector<16x128xf32> to vector<1x16x128xf32>
    tpu.vector_store %arg5[%c0_6, %c0_7, %c0_8], %9 {strides = array<i32>} : memref<1x16x128xf32, #tpu.memory_space<vmem>>, vector<1x16x128xf32>,
    return
  }
  func.func @transform_0(%arg0: i32, %arg1: i32) -> (i32, i32, i32) {
    %c0_i32 = arith.constant 0 : i32
    %c0_i32_0 = arith.constant 0 : i32
    return %arg0, %arg1, %c0_i32 : i32, i32, i32
  }
  func.func @transform_1(%arg0: i32, %arg1: i32) -> (i32, i32) {
    %c0_i32 = arith.constant 0 : i32
    %c0_i32_0 = arith.constant 0 : i32
    %c0_i32_1 = arith.constant 0 : i32
    return %c0_i32, %c0_i32_0 : i32, i32
  }
  func.func @transform_2(%arg0: i32, %arg1: i32) -> (i32, i32) {
    %c0_i32 = arith.constant 0 : i32
    %c0_i32_0 = arith.constant 0 : i32
    %c0_i32_1 = arith.constant 0 : i32
    return %c0_i32, %c0_i32_0 : i32, i32
  }
  func.func @transform_3(%arg0: i32, %arg1: i32) -> (i32, i32, i32) {
    %c0_i32 = arith.constant 0 : i32
    %c0_i32_0 = arith.constant 0 : i32
    return %arg0, %arg1, %c0_i32 : i32, i32, i32
  }
}

</mosaic_0001>

<bundles_post_ra>
// kernel: _patch_embed_impl.1
= control target key start
LH: loop header
LB: loop body
LE: loop exit
PB: predicated region body
PF: predicated region fallthrough
CT: control target
= control target key end

     0   :  { %8 = vsyncpa [#allocation3], 0  ;;  %s744_s0 = inlined_call_operand.vmem [shape: f32[2,16,64], index: 0, kind: input, shape index: {}]   ;;  %s745_s1 = inlined_call_operand.vmem [shape: f32[64,128], index: 1, kind: input, shape index: {}]   ;;  %s746_s2 = inlined_call_operand.vmem [shape: f32[1,128], index: 2, kind: input, shape index: {}]   ;;  %s747_s3 = inlined_call_operand.hbm [shape: f32[2,16,128], index: 3, kind: output, shape index: {}]  }
   0x1   :  { %10 = vsyncpa [#allocation3 + $0x1], 0  ;;  %s601_s12 = smov 0   ;;  %s603_s13 = smov 0  }
   0x2   :  { %s605_s14 = smov 0   ;;  %s607_s15 = smov 0  }
   0x3   :  { %s609_s16 = smov 0   ;;  %s611_s17 = smov 0  }
   0x4 LB: > { %s396_s18 = sadd.s32 4294967295, %s576_s17   ;;  %s397_s19 = sadd.s32 4294967294, %s576_s17   ;;  %s576_s17 = sphi %s611_s17, %s16_s17   ;;  %s572_s16 = sphi %s609_s16, %s754_s16   ;;  %s568_s15 = sphi %s607_s15, %s753_s15   ;;  %s564_s14 = sphi %s605_s14, %s752_s14   ;;  %s560_s13 = sphi %s603_s13, %s751_s13   ;;  %s556_s12 = sphi %s601_s12, %s750_s12  }
   0x5   : > { %s28_s20 = sadd.s32 1, %s572_s16  ;;  %s107_s21 = sadd.s32 1, %s564_s14 }
   0x6   : > { %p30_p0 = scmp.ge.s32.totalorder %s28_s20, 2  ;;  %p117_p1 = scmp.ne.s32.totalorder %s564_s14, %s560_s13 }
   0x7   : > { %p118_p2 = scmp.eq.s32.totalorder %s396_s18, 1  ;;  %p123_p3 = scmp.ne.s32.totalorder %s560_s13, %s556_s12 }
   0x8   : > { %s756_s20 = smov (%p30_p0, %s28_s20), 0  ;;  %p124_p5 = scmp.eq.s32.totalorder %s397_s19, 1 }
   0x9   : > { %p641_p4 = por %p118_p2, %p117_p1  ;;  %s102_s23 = ssub.s32 %s572_s16, %s756_s20 }
   0xa   : > { %p400_p6 = scmp.ge.s32.totalorder %s576_s17, 1  ;;  %p105_p7 = scmp.eq.s32.totalorder %s102_s23, 0 }
   0xb   : > { %p648_p8 = por %p124_p5, %p123_p3  ;;  %p161_p9 = scmp.lt.s32.totalorder %s576_s17, 3 }
   0xc   : > { %s654_s25 = scalar_select %p105_p7, %s564_s14, %s107_s21  }
   0xd   : > { %p162_p10 = pnand %p400_p6, %p161_p9 }
   0xe   : > { %p190_p11 = scmp.lt.s32.totalorder (!%p162_p10), %s568_s15, 1  ;;  %s186_s30 = sand.u32 (!%p162_p10), 1, %s560_s13  }
   0xf   : > { %165 = sbr.rel (%p162_p10) target bundleno = 248 (0xf8), region = 32  ;;  %s401_s4 = sshll.u32 (!%p162_p10), %s186_s30, 4 }
  0x10   : > { %s188_s7 = scalar_lea.vmem (!%p162_p10), [#allocation2], %s401_s4  ;;  %s413_s9 = sshll.u32 (!%p162_p10), %s568_s15, 8 }
  0x11   : > { %s697_s18 = scalar_lea.hbm (!%p162_p10), %s747_s3, %s413_s9  ;;  %s699_s19 = scalar_lea.sflag (!%p162_p10), [#allocation3], %s186_s30 }
  0x14   : > { %v209_v0 = vld [vmem:[%s745_s1 + $0x38] sm:$0xff]  ;;  %v208_v1 = vld [vmem:[%s745_s1 + $0x30] sm:$0xff]  ;;  %v207_v2 = vld [vmem:[%s745_s1 + $0x28] sm:$0xff]  ;;  %s191_s5 = scalar_select %p190_p11, %s568_s15, 1  ;;  %vm217_vm0 = vcmask 523264  }
  0x15   : > { %424 = vmatprep.subr.mxu0 %v209_v0  ;;  %v206_v3 = vld [vmem:[%s745_s1 + $0x20] sm:$0xff]  ;;  %v205_v4 = vld [vmem:[%s745_s1 + $0x18] sm:$0xff]  ;;  %v204_v6 = vld [vmem:[%s745_s1 + $0x10] sm:$0xff]  ;;  %s578_s15 = smov [#allocation2]  }
  0x16   : > { %425 = vmatpush3.msra.mxu0 %v209_v0  ;;  %s412_s8 = sshll.u32 %s191_s5, 4  ;;  %v203_v7 = vld [vmem:[%s745_s1 + $0x8] sm:$0xff]  ;;  %v202_v8 = vld [vmem:[%s745_s1] sm:$0xff]  ;;  %s504_s23 = sshll.u32 %s578_s15, 4  ;;  %s505_s23 = int_to_ptr.vmem [resolvable:$false] %s504_s23 }
  0x17   : > { %426 = vmatprep.subr.mxu0 %v208_v1  ;;  %s197_s11 = scalar_lea.vmem %s744_s0, %s412_s8  ;;  %v404_v10 = vld [vmem:[%s746_s2] ss:$0 sm:$0xff]  ;;  %s317_s8 = sshll.u32 %s188_s7, 4  ;;  %s692_s8 = int_to_ptr.vmem [resolvable:$true] %s317_s8 }
  0x18   : > { %427 = vmatpush3.msra.mxu0 %v208_v1  ;;  %v200_v5 = vld [vmem:[%s197_s11] sm:$0xff]  ;;  %v201_v9 = vld [vmem:[%s197_s11 + $0x8] sm:$0xff]  ;;  %s500_s21 = scalar_lea.vmem %s692_s8, 256  ;;  %s506_s26 = scalar_lea.vmem %s505_s23, 512 }
  0x19   : > { %428 = vmatprep.subr.mxu0 %v207_v2  ;;  %440 = vmatprep.mubr.msk.f32.mxu0 %vm217_vm0, %v200_v5  ;;  %p501_p12 = scmp.ne.s32.totalorder %s692_s8, %s500_s21  ;;  %p507_p1 = scmp.lt.s32.totalorder %s692_s8, %s505_s23 }
  0x1a   : > { %429 = vmatpush3.msra.mxu0 %v207_v2  ;;  %p508_p2 = scmp.lt.s32.totalorder %s506_s26, %s500_s21 }
  0x1b   : > { %430 = vmatprep.subr.mxu0 %v206_v3  ;;  %p502_p13 = pnand %p501_p12, %p641_p4 }
  0x1c   : > { %431 = vmatpush3.msra.mxu0 %v206_v3  ;;  %p509_p3 = por %p508_p2, %p507_p1 }
  0x1d   : > { %432 = vmatprep.subr.mxu0 %v205_v4  ;;  %p503_p0 = pneg %p502_p13 }
  0x1e   : > { %433 = vmatpush3.msra.mxu0 %v205_v4 }
  0x1f   : > { %434 = vmatprep.subr.mxu0 %v204_v6  ;;  %p510_p5 = pnand %p509_p3, %p503_p0 }
  0x20   : > { %435 = vmatpush3.msra.mxu0 %v204_v6 }
  0x21   : > { %436 = vmatprep.subr.mxu0 %v203_v7 }
  0x22   : > { %437 = vmatpush3.msra.mxu0 %v203_v7 }
  0x23   : > { %438 = vmatprep.subr.mxu0 %v202_v8 }
  0x24   : > { %439 = vmatpush3.msra.mxu0 %v202_v8 }
  0x25   : > { %441 = vmatmul.mubr.msk.f32.vlgmr.msra.gmra.mxu0 %vm217_vm0, %v201_v9 }
  0xe5   : > { %v442_v11 = vpop.f32.mrf.mxu0 }
  0xe6   : > { %v296_v12 = vadd.f32 %v442_v11, %v404_v10 }
  0xe7   : > { %v290_v13 = vpop.f32.mrf.mxu0 }
  0xe8   : > { %300 = vst [vmem:[%s188_s7 + $0x8] sm:$0xff] %v296_v12  ;;  %v291_v14 = vadd.f32 %v404_v10, %v290_v13 }
  0xea   : > { %299 = vst [vmem:[%s188_s7] sm:$0xff] %v291_v14 }
  0xeb   : > { %513 = shalt.err (!%p510_p5)
}
  0xec   : > { %s514_s27 = scalar_lea.hbm %s697_s18, 256  ;;  %s518_s30 = scalar_lea.hbm %s747_s3, 512 }
  0xed   : > { %p515_p6 = scmp.ne.s32.totalorder %s697_s18, %s514_s27  ;;  %p519_p10 = scmp.lt.s32.totalorder %s697_s18, %s747_s3 }
  0xee   : > { %p520_p11 = scmp.lt.s32.totalorder %s518_s30, %s514_s27 }
  0xef   : > { %p516_p7 = pnand %p515_p6, %p641_p4 }
  0xf0   : > { %p521_p12 = por %p520_p11, %p519_p10 }
  0xf1   : > { %p517_p9 = pneg %p516_p7 }
  0xf3   : > { %p522_p13 = pnand %p521_p12, %p517_p9 }
  0xf5   : > { %525 = shalt.err (!%p522_p13)
}
  0xf6   : > { %s579_s6 = smov 128   ;;  %s580_s7 = smov 8  }
  0xf7   : > { %443 = dma.vmem_to_hbm [thread:$0]  (%p641_p4), %s692_s8, 256, %s697_s18, %s699_s19, %s579_s6, %s579_s6, %s580_s7  }
  0xf8 PF: > { %p449_p0 = scmp.ge.s32.totalorder %s576_s17, 2  ;;  %s332_s9 = sand.u32 1, %s556_s12  }
  0xf9   : > { %s333_s10 = scalar_lea.sflag [#allocation3], %s332_s9 }
  0xfa   : > { %p446_p1 = pnand %p449_p0, %p648_p8 }
  0xfc   : > { %p447_p2 = pneg %p446_p1 }
  0xfe   : > { %551 = dma.done.wait (%p447_p2), %s333_s10, 256  }
  0xff   : > { %553 = vsyncadd (%p447_p2), %s333_s10, 4294967040  ;;  %s16_s17 = sadd.s32 1, %s576_s17   ;;  %s750_s12 = smov %s560_s13 }
 0x100   : > { %p13_p3 = scmp.ge.s32.totalorder %s16_s17, 4   ;;  %s751_s13 = smov %s564_s14 }
 0x101   : > { %s752_s14 = smov %s654_s25  ;;  %s753_s15 = smov %s572_s16 }
 0x102   : > { %s754_s16 = smov %s756_s20  ;;  %15 = sbr.rel (!%p13_p3) target bundleno = 4 (0x4), region = 67 }
 0x107   :  { %338 = vsyncpa [#allocation3], 1 }
 0x108   :  { %340 = vsyncpa [#allocation3 + $0x1], 1 }

// kernel: _patch_embed_impl.1
= control target key start
LH: loop header
LB: loop body
LE: loop exit
PB: predicated region body
PF: predicated region fallthrough
CT: control target
= control target key end

     0   :  { %8 = vsyncpa [#allocation3], 0  ;;  %s744_s0 = inlined_call_operand.vmem [shape: f32[2,16,64], index: 0, kind: input, shape index: {}]   ;;  %s745_s1 = inlined_call_operand.vmem [shape: f32[64,128], index: 1, kind: input, shape index: {}]   ;;  %s746_s2 = inlined_call_operand.vmem [shape: f32[1,128], index: 2, kind: input, shape index: {}]   ;;  %s747_s3 = inlined_call_operand.hbm [shape: f32[2,16,128], index: 3, kind: output, shape index: {}]  }
   0x1   :  { %10 = vsyncpa [#allocation3 + $0x1], 0  ;;  %s601_s12 = smov 0   ;;  %s603_s13 = smov 0  }
   0x2   :  { %s605_s14 = smov 0   ;;  %s607_s15 = smov 0  }
   0x3   :  { %s609_s16 = smov 0   ;;  %s611_s17 = smov 0  }
   0x4 LB: > { %s396_s18 = sadd.s32 4294967295, %s576_s17   ;;  %s397_s19 = sadd.s32 4294967294, %s576_s17   ;;  %s576_s17 = sphi %s611_s17, %s16_s17   ;;  %s572_s16 = sphi %s609_s16, %s754_s16   ;;  %s568_s15 = sphi %s607_s15, %s753_s15   ;;  %s564_s14 = sphi %s605_s14, %s752_s14   ;;  %s560_s13 = sphi %s603_s13, %s751_s13   ;;  %s556_s12 = sphi %s601_s12, %s750_s12  }
   0x5   : > { %s28_s20 = sadd.s32 1, %s572_s16  ;;  %s107_s21 = sadd.s32 1, %s564_s14 }
   0x6   : > { %p30_p0 = scmp.ge.s32.totalorder %s28_s20, 2  ;;  %p117_p1 = scmp.ne.s32.totalorder %s564_s14, %s560_s13 }
   0x7   : > { %p118_p2 = scmp.eq.s32.totalorder %s396_s18, 1  ;;  %p123_p3 = scmp.ne.s32.totalorder %s560_s13, %s556_s12 }
   0x8   : > { %s756_s20 = smov (%p30_p0, %s28_s20), 0  ;;  %p124_p5 = scmp.eq.s32.totalorder %s397_s19, 1 }
   0x9   : > { %p641_p4 = por %p118_p2, %p117_p1  ;;  %s102_s23 = ssub.s32 %s572_s16, %s756_s20 }
   0xa   : > { %p400_p6 = scmp.ge.s32.totalorder %s576_s17, 1  ;;  %p105_p7 = scmp.eq.s32.totalorder %s102_s23, 0 }
   0xb   : > { %p648_p8 = por %p124_p5, %p123_p3  ;;  %p161_p9 = scmp.lt.s32.totalorder %s576_s17, 3 }
   0xc   : > { %s654_s25 = scalar_select %p105_p7, %s564_s14, %s107_s21  }
   0xd   : > { %p162_p10 = pnand %p400_p6, %p161_p9 }
   0xe   : > { %p190_p11 = scmp.lt.s32.totalorder (!%p162_p10), %s568_s15, 1  ;;  %s186_s30 = sand.u32 (!%p162_p10), 1, %s560_s13  }
   0xf   : > { %165 = sbr.rel (%p162_p10) target bundleno = 248 (0xf8), region = 32  ;;  %s401_s4 = sshll.u32 (!%p162_p10), %s186_s30, 4 }
  0x10   : > { %s188_s7 = scalar_lea.vmem (!%p162_p10), [#allocation2], %s401_s4  ;;  %s413_s9 = sshll.u32 (!%p162_p10), %s568_s15, 8 }
  0x11   : > { %s697_s18 = scalar_lea.hbm (!%p162_p10), %s747_s3, %s413_s9  ;;  %s699_s19 = scalar_lea.sflag (!%p162_p10), [#allocation3], %s186_s30 }
  0x14   : > { %v209_v0 = vld [vmem:[%s745_s1 + $0x38] sm:$0xff]  ;;  %v208_v1 = vld [vmem:[%s745_s1 + $0x30] sm:$0xff]  ;;  %v207_v2 = vld [vmem:[%s745_s1 + $0x28] sm:$0xff]  ;;  %s191_s5 = scalar_select %p190_p11, %s568_s15, 1  ;;  %vm217_vm0 = vcmask 523264  }
  0x15   : > { %424 = vmatprep.subr.mxu0 %v209_v0  ;;  %v206_v3 = vld [vmem:[%s745_s1 + $0x20] sm:$0xff]  ;;  %v205_v4 = vld [vmem:[%s745_s1 + $0x18] sm:$0xff]  ;;  %v204_v6 = vld [vmem:[%s745_s1 + $0x10] sm:$0xff]  ;;  %s578_s15 = smov [#allocation2]  }
  0x16   : > { %425 = vmatpush3.msra.mxu0 %v209_v0  ;;  %s412_s8 = sshll.u32 %s191_s5, 4  ;;  %v203_v7 = vld [vmem:[%s745_s1 + $0x8] sm:$0xff]  ;;  %v202_v8 = vld [vmem:[%s745_s1] sm:$0xff]  ;;  %s504_s23 = sshll.u32 %s578_s15, 4  ;;  %s505_s23 = int_to_ptr.vmem [resolvable:$false] %s504_s23 }
  0x17   : > { %426 = vmatprep.subr.mxu0 %v208_v1  ;;  %s197_s11 = scalar_lea.vmem %s744_s0, %s412_s8  ;;  %v404_v10 = vld [vmem:[%s746_s2] ss:$0 sm:$0xff]  ;;  %s317_s8 = sshll.u32 %s188_s7, 4  ;;  %s692_s8 = int_to_ptr.vmem [resolvable:$true] %s317_s8 }
  0x18   : > { %427 = vmatpush3.msra.mxu0 %v208_v1  ;;  %v200_v5 = vld [vmem:[%s197_s11] sm:$0xff]  ;;  %v201_v9 = vld [vmem:[%s197_s11 + $0x8] sm:$0xff]  ;;  %s500_s21 = scalar_lea.vmem %s692_s8, 256  ;;  %s506_s26 = scalar_lea.vmem %s505_s23, 512 }
  0x19   : > { %428 = vmatprep.subr.mxu0 %v207_v2  ;;  %440 = vmatprep.mubr.msk.f32.mxu0 %vm217_vm0, %v200_v5  ;;  %p501_p12 = scmp.ne.s32.totalorder %s692_s8, %s500_s21  ;;  %p507_p1 = scmp.lt.s32.totalorder %s692_s8, %s505_s23 }
  0x1a   : > { %429 = vmatpush3.msra.mxu0 %v207_v2  ;;  %p508_p2 = scmp.lt.s32.totalorder %s506_s26, %s500_s21 }
  0x1b   : > { %430 = vmatprep.subr.mxu0 %v206_v3  ;;  %p502_p13 = pnand %p501_p12, %p641_p4 }
  0x1c   : > { %431 = vmatpush3.msra.mxu0 %v206_v3  ;;  %p509_p3 = por %p508_p2, %p507_p1 }
  0x1d   : > { %432 = vmatprep.subr.mxu0 %v205_v4  ;;  %p503_p0 = pneg %p502_p13 }
  0x1e   : > { %433 = vmatpush3.msra.mxu0 %v205_v4 }
  0x1f   : > { %434 = vmatprep.subr.mxu0 %v204_v6  ;;  %p510_p5 = pnand %p509_p3, %p503_p0 }
  0x20   : > { %435 = vmatpush3.msra.mxu0 %v204_v6 }
  0x21   : > { %436 = vmatprep.subr.mxu0 %v203_v7 }
  0x22   : > { %437 = vmatpush3.msra.mxu0 %v203_v7 }
  0x23   : > { %438 = vmatprep.subr.mxu0 %v202_v8 }
  0x24   : > { %439 = vmatpush3.msra.mxu0 %v202_v8 }
  0x25   : > { %441 = vmatmul.mubr.msk.f32.vlgmr.msra.gmra.mxu0 %vm217_vm0, %v201_v9 }
  0xe5   : > { %v442_v11 = vpop.f32.mrf.mxu0 }
  0xe6   : > { %v296_v12 = vadd.f32 %v442_v11, %v404_v10 }
  0xe7   : > { %v290_v13 = vpop.f32.mrf.mxu0 }
  0xe8   : > { %300 = vst [vmem:[%s188_s7 + $0x8] sm:$0xff] %v296_v12  ;;  %v291_v14 = vadd.f32 %v404_v10, %v290_v13 }
  0xea   : > { %299 = vst [vmem:[%s188_s7] sm:$0xff] %v291_v14 }
  0xeb   : > { %513 = shalt.err (!%p510_p5)
}
  0xec   : > { %s514_s27 = scalar_lea.hbm %s697_s18, 256  ;;  %s518_s30 = scalar_lea.hbm %s747_s3, 512 }
  0xed   : > { %p515_p6 = scmp.ne.s32.totalorder %s697_s18, %s514_s27  ;;  %p519_p10 = scmp.lt.s32.totalorder %s697_s18, %s747_s3 }
  0xee   : > { %p520_p11 = scmp.lt.s32.totalorder %s518_s30, %s514_s27 }
  0xef   : > { %p516_p7 = pnand %p515_p6, %p641_p4 }
  0xf0   : > { %p521_p12 = por %p520_p11, %p519_p10 }
  0xf1   : > { %p517_p9 = pneg %p516_p7 }
  0xf3   : > { %p522_p13 = pnand %p521_p12, %p517_p9 }
  0xf5   : > { %525 = shalt.err (!%p522_p13)
}
  0xf6   : > { %s579_s6 = smov 128   ;;  %s580_s7 = smov 8  }
  0xf7   : > { %443 = dma.vmem_to_hbm [thread:$0]  (%p641_p4), %s692_s8, 256, %s697_s18, %s699_s19, %s579_s6, %s579_s6, %s580_s7  }
  0xf8 PF: > { %p449_p0 = scmp.ge.s32.totalorder %s576_s17, 2  ;;  %s332_s9 = sand.u32 1, %s556_s12  }
  0xf9   : > { %s333_s10 = scalar_lea.sflag [#allocation3], %s332_s9 }
  0xfa   : > { %p446_p1 = pnand %p449_p0, %p648_p8 }
  0xfc   : > { %p447_p2 = pneg %p446_p1 }
  0xfe   : > { %551 = dma.done.wait (%p447_p2), %s333_s10, 256  }
  0xff   : > { %553 = vsyncadd (%p447_p2), %s333_s10, 4294967040  ;;  %s16_s17 = sadd.s32 1, %s576_s17   ;;  %s750_s12 = smov %s560_s13 }
 0x100   : > { %p13_p3 = scmp.ge.s32.totalorder %s16_s17, 4   ;;  %s751_s13 = smov %s564_s14 }
 0x101   : > { %s752_s14 = smov %s654_s25  ;;  %s753_s15 = smov %s572_s16 }
 0x102   : > { %s754_s16 = smov %s756_s20  ;;  %15 = sbr.rel (!%p13_p3) target bundleno = 4 (0x4), region = 67 }
 0x107   :  { %338 = vsyncpa [#allocation3], 1 }
 0x108   :  { %340 = vsyncpa [#allocation3 + $0x1], 1 }

</bundles_post_ra>
